<compile_context>
chip_gen: v5e
topology: v5e:2x2
jax: 0.10.0
libtpu: 0.0.40
codegen_flags: <defaults>
</compile_context>

<pallas_src>
import jax
import jax.numpy as jnp
from jax.experimental import pallas as pl
from jax.experimental.pallas import tpu as pltpu

INPUT_SIZE = 10
HIDDEN_SIZE = 20
OUTPUT_SIZE = 1
BATCH = 32
SEQ = 5


def rnn_kernel(x_ref, w_ih_t_ref, w_hh_t_ref, w_fc_t_ref, b_ref, b_fc_ref,
               out_ref):
    """x_ref:      (T*B, I)  time-major, flattened
       w_ih_t_ref: (I, H)    W_ih^T
       w_hh_t_ref: (H, H)    W_hh^T
       w_fc_t_ref: (H, O)    W_fc^T
       b_ref:      (1, H)    b_ih + b_hh (folded once into the projection)
       b_fc_ref:   (1, O)
       out_ref:    (B, O)
    """
    B, O = out_ref.shape
    TB, I = x_ref.shape
    T = TB // B
    H = w_hh_t_ref.shape[0]

    # One batched MXU pass for the input projection of ALL time steps;
    # bias folded in here so nothing extra rides the serial chain.
    xproj = jnp.dot(x_ref[...], w_ih_t_ref[...],
                    preferred_element_type=jnp.float32) + b_ref[...]   # (T*B, H)

    w_hh_t = w_hh_t_ref[...]
    h = jnp.zeros((B, H), jnp.float32)

    # Fully unrolled serial recurrence: one small MXU matmul + VPU add + EUP
    # tanh per step.  t*B is a static, sublane-aligned (multiple of 8) offset.
    for t in range(T):
        pre = xproj[t * B:(t + 1) * B, :] + jnp.dot(
            h, w_hh_t, preferred_element_type=jnp.float32)
        h = jnp.tanh(pre)

    # Final Linear fused into the same kernel.
    out_ref[...] = (jnp.dot(h, w_fc_t_ref[...],
                            preferred_element_type=jnp.float32)
                    + b_fc_ref[...])


def make_fused_params(w_ih, w_hh, b_ih, b_hh, w_fc, b_fc):
    """One-time parameter prep (done at init, NOT per call)."""
    f32 = jnp.float32
    w_ih_t = jnp.asarray(w_ih.T, f32)                      # (I, H)
    w_hh_t = jnp.asarray(w_hh.T, f32)                      # (H, H)
    w_fc_t = jnp.asarray(w_fc.T, f32)                      # (H, O)
    b = (b_ih + b_hh).astype(f32).reshape(1, -1)           # (1, H)
    b_fc_r = jnp.asarray(b_fc, f32).reshape(1, -1)         # (1, O)
    return w_ih_t, w_hh_t, w_fc_t, b, b_fc_r


@jax.jit
def simple_rnn_forward(x_btI, w_ih_t, w_hh_t, w_fc_t, b, b_fc_r):
    """x_btI: (B, T, I) batch-first.  Other args are the pre-fused params."""
    B, T, I = x_btI.shape
    O = w_fc_t.shape[1]

    # Time-major + flatten so every per-step kernel slice is a contiguous,
    # tile-friendly block.  ~19 KiB transpose in the wrapper: free.
    x_flat = jnp.transpose(x_btI.astype(jnp.float32), (1, 0, 2)).reshape(T * B, I)

    vmem = pl.BlockSpec(memory_space=pltpu.MemorySpace.VMEM)
    return pl.pallas_call(
        rnn_kernel,
        out_shape=jax.ShapeDtypeStruct((B, O), jnp.float32),
        # No grid: single invocation, every operand is one resident
        # whole-array VMEM block (no pipeline multi-buffering needed).
        in_specs=[vmem] * 6,
        out_specs=vmem,
    )(x_flat, w_ih_t, w_hh_t, w_fc_t, b, b_fc_r)


def reference_forward(x, w_ih, w_hh, b_ih, b_hh, w_fc, b_fc):
    B, T, I = x.shape
    H = w_ih.shape[0]
    h = jnp.zeros((B, H), jnp.float32)
    for t in range(T):
        h = jnp.tanh(x[:, t, :] @ w_ih.T + b_ih + h @ w_hh.T + b_hh)
    return h @ w_fc.T + b_fc


if __name__ == "__main__":
    key = jax.random.PRNGKey(0)
    kx, k1, k2, k3, k4, k5, k6 = jax.random.split(key, 7)

    x = jax.random.normal(kx, (BATCH, SEQ, INPUT_SIZE), jnp.float32)

    # Deterministic PyTorch-style uniform(-1/sqrt(H), 1/sqrt(H)) init.
    scale = 1.0 / jnp.sqrt(jnp.float32(HIDDEN_SIZE))
    w_ih = jax.random.uniform(k1, (HIDDEN_SIZE, INPUT_SIZE), jnp.float32, -scale, scale)
    w_hh = jax.random.uniform(k2, (HIDDEN_SIZE, HIDDEN_SIZE), jnp.float32, -scale, scale)
    b_ih = jax.random.uniform(k3, (HIDDEN_SIZE,), jnp.float32, -scale, scale)
    b_hh = jax.random.uniform(k4, (HIDDEN_SIZE,), jnp.float32, -scale, scale)
    w_fc = jax.random.uniform(k5, (OUTPUT_SIZE, HIDDEN_SIZE), jnp.float32, -scale, scale)
    b_fc = jax.random.uniform(k6, (OUTPUT_SIZE,), jnp.float32, -scale, scale)

    # One-time prep (outside the per-call path).
    params = make_fused_params(w_ih, w_hh, b_ih, b_hh, w_fc, b_fc)

    out = simple_rnn_forward(x, *params)
    out = jax.block_until_ready(out)

    ref = reference_forward(x, w_ih, w_hh, b_ih, b_hh, w_fc, b_fc)
    assert out.shape == (BATCH, OUTPUT_SIZE)
    assert jnp.allclose(out, ref, atol=1e-5, rtol=1e-5)

    print("KERNEL_OK")
</pallas_src>

<mosaic_0001>
module attributes {stable_mosaic.version = 11 : i64} {
  func.func @rnn_kernel(%arg0: memref<160x10xf32, #tpu.memory_space<vmem>>, %arg1: memref<10x20xf32, #tpu.memory_space<vmem>>, %arg2: memref<20x20xf32, #tpu.memory_space<vmem>>, %arg3: memref<20x1xf32, #tpu.memory_space<vmem>>, %arg4: memref<1x20xf32, #tpu.memory_space<vmem>>, %arg5: memref<1x1xf32, #tpu.memory_space<vmem>>, %arg6: memref<32x1xf32, #tpu.memory_space<vmem>>) attributes {dimension_semantics = [], scalar_prefetch = 0 : i64, scratch_operands = 0 : i64, tpu.core_type = #tpu.core_type<tc>} {
    %c0 = arith.constant 0 : index
    %c0_0 = arith.constant 0 : index
    %0 = vector.load %arg0[%c0, %c0_0] : memref<160x10xf32, #tpu.memory_space<vmem>>, vector<160x10xf32>
    %c0_1 = arith.constant 0 : index
    %c0_2 = arith.constant 0 : index
    %1 = vector.load %arg1[%c0_1, %c0_2] : memref<10x20xf32, #tpu.memory_space<vmem>>, vector<10x20xf32>
    %cst = arith.constant dense<0.000000e+00> : vector<160x20xf32>
    %2 = tpu.matmul %0, %1, %cst {dimension_numbers = #tpu.dot_dimension_numbers<[1], [0], [0], [1], [0, 0, 1, 1], [], []>} : vector<160x10xf32>, vector<10x20xf32>, vector<160x20xf32> -> vector<160x20xf32>
    %c0_3 = arith.constant 0 : index
    %c0_4 = arith.constant 0 : index
    %3 = vector.load %arg4[%c0_3, %c0_4] : memref<1x20xf32, #tpu.memory_space<vmem>>, vector<1x20xf32>
    %4 = vector.broadcast %3 : vector<1x20xf32> to vector<160x20xf32>
    %5 = arith.addf %2, %4 : vector<160x20xf32>
    %c0_5 = arith.constant 0 : index
    %c0_6 = arith.constant 0 : index
    %6 = vector.load %arg2[%c0_5, %c0_6] : memref<20x20xf32, #tpu.memory_space<vmem>>, vector<20x20xf32>
    %cst_7 = arith.constant 0.000000e+00 : f32
    %7 = vector.broadcast %cst_7 : f32 to vector<32x20xf32>
    %8 = vector.extract_strided_slice %5 {offsets = [0, 0], sizes = [32, 20], strides = [1, 1]} : vector<160x20xf32> to vector<32x20xf32>
    %cst_8 = arith.constant dense<0.000000e+00> : vector<32x20xf32>
    %9 = tpu.matmul %7, %6, %cst_8 {dimension_numbers = #tpu.dot_dimension_numbers<[1], [0], [0], [1], [0, 0, 1, 1], [], []>} : vector<32x20xf32>, vector<20x20xf32>, vector<32x20xf32> -> vector<32x20xf32>
    %10 = arith.addf %8, %9 : vector<32x20xf32>
    %11 = math.tanh %10 : vector<32x20xf32>
    %12 = vector.extract_strided_slice %5 {offsets = [32, 0], sizes = [32, 20], strides = [1, 1]} : vector<160x20xf32> to vector<32x20xf32>
    %cst_9 = arith.constant dense<0.000000e+00> : vector<32x20xf32>
    %13 = tpu.matmul %11, %6, %cst_9 {dimension_numbers = #tpu.dot_dimension_numbers<[1], [0], [0], [1], [0, 0, 1, 1], [], []>} : vector<32x20xf32>, vector<20x20xf32>, vector<32x20xf32> -> vector<32x20xf32>
    %14 = arith.addf %12, %13 : vector<32x20xf32>
    %15 = math.tanh %14 : vector<32x20xf32>
    %16 = vector.extract_strided_slice %5 {offsets = [64, 0], sizes = [32, 20], strides = [1, 1]} : vector<160x20xf32> to vector<32x20xf32>
    %cst_10 = arith.constant dense<0.000000e+00> : vector<32x20xf32>
    %17 = tpu.matmul %15, %6, %cst_10 {dimension_numbers = #tpu.dot_dimension_numbers<[1], [0], [0], [1], [0, 0, 1, 1], [], []>} : vector<32x20xf32>, vector<20x20xf32>, vector<32x20xf32> -> vector<32x20xf32>
    %18 = arith.addf %16, %17 : vector<32x20xf32>
    %19 = math.tanh %18 : vector<32x20xf32>
    %20 = vector.extract_strided_slice %5 {offsets = [96, 0], sizes = [32, 20], strides = [1, 1]} : vector<160x20xf32> to vector<32x20xf32>
    %cst_11 = arith.constant dense<0.000000e+00> : vector<32x20xf32>
    %21 = tpu.matmul %19, %6, %cst_11 {dimension_numbers = #tpu.dot_dimension_numbers<[1], [0], [0], [1], [0, 0, 1, 1], [], []>} : vector<32x20xf32>, vector<20x20xf32>, vector<32x20xf32> -> vector<32x20xf32>
    %22 = arith.addf %20, %21 : vector<32x20xf32>
    %23 = math.tanh %22 : vector<32x20xf32>
    %24 = vector.extract_strided_slice %5 {offsets = [128, 0], sizes = [32, 20], strides = [1, 1]} : vector<160x20xf32> to vector<32x20xf32>
    %cst_12 = arith.constant dense<0.000000e+00> : vector<32x20xf32>
    %25 = tpu.matmul %23, %6, %cst_12 {dimension_numbers = #tpu.dot_dimension_numbers<[1], [0], [0], [1], [0, 0, 1, 1], [], []>} : vector<32x20xf32>, vector<20x20xf32>, vector<32x20xf32> -> vector<32x20xf32>
    %26 = arith.addf %24, %25 : vector<32x20xf32>
    %27 = math.tanh %26 : vector<32x20xf32>
    %c0_13 = arith.constant 0 : index
    %c0_14 = arith.constant 0 : index
    %28 = vector.load %arg3[%c0_13, %c0_14] : memref<20x1xf32, #tpu.memory_space<vmem>>, vector<20x1xf32>
    %cst_15 = arith.constant dense<0.000000e+00> : vector<32x1xf32>
    %29 = tpu.matmul %27, %28, %cst_15 {dimension_numbers = #tpu.dot_dimension_numbers<[1], [0], [0], [1], [0, 0, 1, 1], [], []>} : vector<32x20xf32>, vector<20x1xf32>, vector<32x1xf32> -> vector<32x1xf32>
    %c0_16 = arith.constant 0 : index
    %c0_17 = arith.constant 0 : index
    %30 = vector.load %arg5[%c0_16, %c0_17] : memref<1x1xf32, #tpu.memory_space<vmem>>, vector<1x1xf32>
    %31 = vector.broadcast %30 : vector<1x1xf32> to vector<32x1xf32>
    %32 = arith.addf %29, %31 : vector<32x1xf32>
    %c0_18 = arith.constant 0 : index
    %c0_19 = arith.constant 0 : index
    %33 = vector.load %arg6[%c0_18, %c0_19] : memref<32x1xf32, #tpu.memory_space<vmem>>, vector<32x1xf32>
    tpu.vector_store %arg6[%c0_18, %c0_19], %32 {strides = array<i32>} : memref<32x1xf32, #tpu.memory_space<vmem>>, vector<32x1xf32>,
    return
  }
}

</mosaic_0001>

<bundles_post_ra>
// kernel: simple_rnn_forward.1
= control target key start
LH: loop header
LB: loop body
LE: loop exit
PB: predicated region body
PF: predicated region fallthrough
CT: control target
= control target key end

     0   :  { %vm112_vm0 = vcmask 1041408   ;;  %vm51_vm1 = vcmask 80896   ;;  %vm200_vm2 = vcmask 1043456   ;;  %v594_v7 = vmov 0.0   ;;  %s807_s1 = inlined_call_operand.vmem [shape: f32[10,20], index: 1, kind: input, shape index: {}]   ;;  %s808_s0 = inlined_call_operand.vmem [shape: f32[160,10], index: 0, kind: input, shape index: {}]   ;;  %s809_s2 = inlined_call_operand.vmem [shape: f32[20,20], index: 2, kind: input, shape index: {}]   ;;  %s810_s4 = inlined_call_operand.vmem [shape: f32[1,20], index: 4, kind: input, shape index: {}]   ;;  %s811_s3 = inlined_call_operand.vmem [shape: f32[20,1], index: 3, kind: input, shape index: {}]   ;;  %s812_s5 = inlined_call_operand.<no memory space> [shape: f32[1,1], index: 5, kind: input, shape index: {}]   ;;  %s813_s6 = inlined_call_operand.vmem [shape: f32[32,1], index: 6, kind: output, shape index: {}]  }
   0x1   :  { %v46_v0 = vld [vmem:[%s807_s1 + $0x8] sm:$0x3]  ;;  %v45_v1 = vld [vmem:[%s807_s1] sm:$0xff]  ;;  %v43_v2 = vld [vmem:[%s808_s0 + $0x90] sm:$0xff]  ;;  %vm196_vm3 = vcmask 162816   ;;  %vm488_vm4 = vcmask 7168  }
   0x2   :  { %545 = vmatpush.msk.msra.mxu2 %vm112_vm0, %v46_v0  ;;  %v195_v3 = vld [vmem:[%s809_s2 + $0x10] sm:$0xf]  ;;  %497 = vmatpush.msk.msra.mxu0 %vm112_vm0, %v46_v0  ;;  %v25_v4 = vld [vmem:[%s808_s0] sm:$0xff]  ;;  %v194_v5 = vld [vmem:[%s809_s2 + $0x8] sm:$0xff] }
   0x3   :  { %548 = vmatpush.msk.msra.mxu3 %vm200_vm2, %v195_v3  ;;  %544 = vmatpush.msk.msra.mxu1 %vm112_vm0, %v46_v0  ;;  %v193_v6 = vld [vmem:[%s809_s2] sm:$0xff]  ;;  %v44_v8 = vld [vmem:[%s808_s0 + $0x98] sm:$0xff]  ;;  %v26_v9 = vld [vmem:[%s808_s0 + $0x8] sm:$0xff] }
   0x4   :  { %547 = vmatpush.msra.mxu2 %v45_v1  ;;  %131 = vmatpush.msra.mxu0 %v45_v1  ;;  %v27_v10 = vld [vmem:[%s808_s0 + $0x10] sm:$0xff]  ;;  %v28_v11 = vld [vmem:[%s808_s0 + $0x18] sm:$0xff]  ;;  %v29_v12 = vld [vmem:[%s808_s0 + $0x20] sm:$0xff] }
   0x5   :  { %516 = vmatmul.msk.f32.vlgmr.msra.gmra.mxu2 %vm51_vm1, %v43_v2  ;;  %498 = vmatmul.msk.f32.vlgmr.msra.gmra.mxu0 %vm51_vm1, %v25_v4  ;;  %v30_v15 = vld [vmem:[%s808_s0 + $0x28] sm:$0xff]  ;;  %v31_v18 = vld [vmem:[%s808_s0 + $0x30] sm:$0xff]  ;;  %v693_v19 = vld [vmem:[%s810_s4] ss:$0 sm:$0xff] }
   0x6   :  { %518 = vmatpush.msk.msrb.mxu2 %vm200_vm2, %v195_v3  ;;  %549 = vmatpush.msra.mxu3 %v194_v5  ;;  %v32_v25 = vld [vmem:[%s808_s0 + $0x38] sm:$0xff]  ;;  %v33_v39 = vld [vmem:[%s808_s0 + $0x40] sm:$0xff]  ;;  %v34_v40 = vld [vmem:[%s808_s0 + $0x48] sm:$0xff] }
   0x7   :  { %546 = vmatpush.msra.mxu1 %v45_v1  ;;  %v35_v42 = vld [vmem:[%s808_s0 + $0x50] sm:$0xff]  ;;  %v36_v47 = vld [vmem:[%s808_s0 + $0x58] sm:$0xff]  ;;  %v37_v51 = vld [vmem:[%s808_s0 + $0x60] sm:$0xff] }
   0x8   :  { %218 = vmatpush.msrb.mxu2 %v194_v5  ;;  %550 = vmatpush.msra.mxu3 %v193_v6  ;;  %v38_v56 = vld [vmem:[%s808_s0 + $0x68] sm:$0xff]  ;;  %v39_v62 = vld [vmem:[%s808_s0 + $0x70] sm:$0xff]  ;;  %v40_v1 = vld [vmem:[%s808_s0 + $0x78] sm:$0xff] }
   0x9   :  { %223 = vmatmul.f32.vlgmr.msra.gmra.mxu3 %v594_v7  ;;  %529 = vmatpush.msk.msrb.mxu1 %vm200_vm2, %v195_v3  ;;  %v42_v4 = vld [vmem:[%s808_s0 + $0x88] sm:$0xff] }
   0xa   :  { %219 = vmatpush.msrb.mxu2 %v193_v6  ;;  %524 = vmatpush.msk.msrb.mxu3 %vm200_vm2, %v195_v3 }
   0xb   :  { %365 = vmatpush.msrb.mxu1 %v194_v5 }
   0xc   :  { %519 = vmatpush.msk.msra.mxu2 %vm200_vm2, %v195_v3  ;;  %316 = vmatpush.msrb.mxu3 %v194_v5 }
   0xd   :  { %517 = vmatmul.msk.f32.gmra.mxu2 %vm51_vm1, %v44_v8  ;;  %499 = vmatmul.msk.f32.gmra.mxu0 %vm51_vm1, %v26_v9 }
   0xe   :  { %267 = vmatpush.msra.mxu2 %v194_v5  ;;  %317 = vmatpush.msrb.mxu3 %v193_v6 }
   0xf   :  { %366 = vmatpush.msrb.mxu1 %v193_v6 }
  0x10   :  { %268 = vmatpush.msra.mxu2 %v193_v6  ;;  %509 = vmatmul.msk.f32.vlgmr.msra.gmra.mxu1 %vm51_vm1, %v36_v47 }
  0x11   :  { %226 = vmatmul.f32.gmra.mxu3 %v594_v7 }
  0x15   :  { %220 = vmatmul.f32.vlgmr.msrb.gmra.mxu2 %v594_v7  ;;  %500 = vmatmul.msk.f32.gmra.mxu0 %vm51_vm1, %v27_v10 }
  0x16   :  { %534 = vmatpush.msk.msrb.mxu2 %vm200_vm2, %v195_v3  ;;  %v41_v3 = vld [vmem:[%s808_s0 + $0x80] sm:$0xff] }
  0x18   :  { %414 = vmatpush.msrb.mxu2 %v194_v5  ;;  %510 = vmatmul.msk.f32.gmra.mxu1 %vm51_vm1, %v37_v51 }
  0x19   :  { %229 = vmatmul.f32.gmra.mxu3 %v594_v7 }
  0x1a   :  { %415 = vmatpush.msrb.mxu2 %v193_v6 }
  0x1d   :  { %501 = vmatmul.msk.f32.gmra.mxu0 %vm51_vm1, %v28_v11 }
  0x20   :  { %511 = vmatmul.msk.f32.gmra.mxu1 %vm51_vm1, %v38_v56  ;;  %v11_v56 = vstv %s812_s5 }
  0x21   :  { %12 = vst [vmem:[#allocation2] sm:$0x1] %v11_v56 }
  0x25   :  { %502 = vmatmul.msk.f32.gmra.mxu0 %vm51_vm1, %v29_v12 }
  0x28   :  { %512 = vmatmul.msk.f32.gmra.mxu1 %vm51_vm1, %v39_v62 }
  0x2d   :  { %503 = vmatmul.msk.f32.gmra.mxu0 %vm51_vm1, %v30_v15 }
  0x30   :  { %513 = vmatmul.msk.f32.gmra.mxu1 %vm51_vm1, %v40_v1 }
  0x35   :  { %504 = vmatmul.msk.f32.gmra.mxu0 %vm51_vm1, %v31_v18 }
  0x38   :  { %514 = vmatmul.msk.f32.gmra.mxu1 %vm51_vm1, %v41_v3 }
  0x3d   :  { %505 = vmatmul.msk.f32.gmra.mxu0 %vm51_vm1, %v32_v25 }
  0x40   :  { %515 = vmatmul.msk.f32.gmra.mxu1 %vm51_vm1, %v42_v4 }
  0x45   :  { %506 = vmatmul.msk.f32.gmra.mxu0 %vm51_vm1, %v33_v39 }
  0x4d   :  { %507 = vmatmul.msk.f32.gmra.mxu0 %vm51_vm1, %v34_v40 }
  0x55   :  { %508 = vmatmul.msk.f32.gmra.mxu0 %vm51_vm1, %v35_v42 }
  0x82   :  { %v133_v14 = vpop.f32.mrf.mxu0 }
  0x83   :  { %v134_v20 = vadd.f32 %v693_v19, %v133_v14 }
  0x88   :  { %v679_v13 = vpop.f32.mrf.mxu2 }
  0x8a   :  { %v136_v17 = vpop.f32.mrf.mxu0 }
  0x8b   :  { %v137_v24 = vadd.f32 %v693_v19, %v136_v17 }
  0x8c   :  { %v224_v21 = vpop.f32.mrf.mxu3 }
  0x8d   :  { %v234_v27 = vadd.f32 %v224_v21, %v137_v24 }
  0x90   :  { %v685_v16 = vpop.f32.mrf.mxu2 }
  0x91   :  { %v191_v1 = vadd.f32 %v693_v19, %v685_v16 }
  0x92   :  { %v139_v26 = vpop.f32.mrf.mxu0 }
  0x93   :  { %v140_v30 = vadd.f32 %v693_v19, %v139_v26 }
  0x94   :  { %v227_v28 = vpop.f32.mrf.mxu3 }
  0x95   :  { %v235_v31 = vadd.f32 %v227_v28, %v140_v30 }
  0x98   :  { %v221_v22 = vpop.f32.mrf.mxu2 }
  0x99   :  { %v233_v23 = vadd.f32 %v221_v22, %v134_v20  ;;  %v166_v22 = vpop.f32.mrf.mxu1 }
  0x9a   :  { %v142_v32 = vpop.f32.mrf.mxu0 }
  0x9b   :  { %554 = vtanh.f32 %v233_v23  ;;  %v143_v34 = vadd.f32 %v693_v19, %v142_v32  ;;  %v167_v23 = vadd.f32 %v693_v19, %v166_v22 }
  0x9c   :  { %556 = vtanh.f32 %v234_v27  ;;  %v230_v35 = vpop.f32.mrf.mxu3 }
  0x9d   :  { %558 = vtanh.f32 %v235_v31  ;;  %v236_v36 = vadd.f32 %v230_v35, %v143_v34 }
  0x9f   :  { %560 = vtanh.f32 %v236_v36 }
  0xa1   :  { %v555_v29 = vpop.eup %554  ;;  %v169_v28 = vpop.f32.mrf.mxu1 }
  0xa2   :  { %520 = vmatmul.msk.f32.vlgmr.msra.gmra.mxu2 %vm196_vm3, %v555_v29  ;;  %v557_v33 = vpop.eup %556  ;;  %v145_v41 = vpop.f32.mrf.mxu0  ;;  %v170_v34 = vadd.f32 %v693_v19, %v169_v28 }
  0xa3   :  { %v559_v37 = vpop.eup %558  ;;  %v146_v43 = vadd.f32 %v693_v19, %v145_v41 }
  0xa5   :  { %v561_v38 = vpop.eup %560 }
  0xa9   :  { %v172_v29 = vpop.f32.mrf.mxu1 }
  0xaa   :  { %521 = vmatmul.msk.f32.gmra.mxu2 %vm196_vm3, %v557_v33  ;;  %v148_v44 = vpop.f32.mrf.mxu0  ;;  %v173_v39 = vadd.f32 %v693_v19, %v172_v29 }
  0xab   :  { %v149_v48 = vadd.f32 %v693_v19, %v148_v44 }
  0xb1   :  { %v175_v30 = vpop.f32.mrf.mxu1 }
  0xb2   :  { %522 = vmatmul.msk.f32.gmra.mxu2 %vm196_vm3, %v559_v37  ;;  %v151_v50 = vpop.f32.mrf.mxu0  ;;  %v439_v37 = vld [vmem:[%s811_s3 + $0x10] sm:$0xf] }
  0xb3   :  { %v152_v54 = vadd.f32 %v693_v19, %v151_v50  ;;  %539 = vmatpush.msk.msra.mxu3 %vm200_vm2, %v439_v37 }
  0xb9   :  { %v178_v31 = vpop.f32.mrf.mxu1 }
  0xba   :  { %523 = vmatmul.msk.f32.gmra.mxu2 %vm196_vm3, %v561_v38  ;;  %v154_v59 = vpop.f32.mrf.mxu0  ;;  %v438_v38 = vld [vmem:[%s811_s3 + $0x8] sm:$0xff]  ;;  %v179_v47 = vadd.f32 %v693_v19, %v178_v31 }
  0xbb   :  { %v155_v60 = vadd.f32 %v693_v19, %v154_v59  ;;  %473 = vmatpush.msra.mxu3 %v438_v38 }
  0xc1   :  { %v181_v32 = vpop.f32.mrf.mxu1 }
  0xc2   :  { %v157_v5 = vpop.f32.mrf.mxu0 }
  0xc3   :  { %v158_v6 = vadd.f32 %v693_v19, %v157_v5 }
  0xc9   :  { %v184_v33 = vpop.f32.mrf.mxu1 }
  0xca   :  { %v160_v8 = vpop.f32.mrf.mxu0 }
  0xcb   :  { %v161_v10 = vadd.f32 %v693_v19, %v160_v8 }
  0xd2   :  { %v163_v15 = vpop.f32.mrf.mxu0 }
  0xd3   :  { %v164_v17 = vadd.f32 %v693_v19, %v163_v15 }
 0x125   :  { %v270_v45 = vpop.f32.mrf.mxu2 }
 0x126   :  { %v282_v46 = vadd.f32 %v270_v45, %v146_v43  ;;  %v176_v43 = vadd.f32 %v693_v19, %v175_v30 }
 0x128   :  { %562 = vtanh.f32 %v282_v46 }
 0x12d   :  { %v273_v49 = vpop.f32.mrf.mxu2 }
 0x12e   :  { %v563_v52 = vpop.eup %562  ;;  %v283_v53 = vadd.f32 %v273_v49, %v149_v48 }
 0x12f   :  { %525 = vmatmul.msk.f32.vlgmr.msrb.gmra.mxu3 %vm196_vm3, %v563_v52  ;;  %v437_v52 = vld [vmem:[%s811_s3] sm:$0xff] }
 0x130   :  { %564 = vtanh.f32 %v283_v53  ;;  %474 = vmatpush.msra.mxu3 %v437_v52  ;;  %v182_v53 = vadd.f32 %v693_v19, %v181_v32 }
 0x135   :  { %v276_v55 = vpop.f32.mrf.mxu2 }
 0x136   :  { %v565_v57 = vpop.eup %564  ;;  %v284_v58 = vadd.f32 %v276_v55, %v152_v54 }
 0x137   :  { %526 = vmatmul.msk.f32.gmra.mxu3 %vm196_vm3, %v565_v57  ;;  %v185_v57 = vadd.f32 %v693_v19, %v184_v33 }
 0x138   :  { %566 = vtanh.f32 %v284_v58 }
 0x13d   :  { %v279_v61 = vpop.f32.mrf.mxu2 }
 0x13e   :  { %v567_v63 = vpop.eup %566  ;;  %v285_v0 = vadd.f32 %v279_v61, %v155_v60  ;;  %v188_v61 = vadd.f32 %v693_v19, %v679_v13 }
 0x13f   :  { %527 = vmatmul.msk.f32.gmra.mxu3 %vm196_vm3, %v567_v63 }
 0x140   :  { %568 = vtanh.f32 %v285_v0 }
 0x146   :  { %v569_v2 = vpop.eup %568 }
 0x147   :  { %528 = vmatmul.msk.f32.gmra.mxu3 %vm196_vm3, %v569_v2 }
 0x1b2   :  { %v319_v7 = vpop.f32.mrf.mxu3 }
 0x1b3   :  { %v331_v9 = vadd.f32 %v319_v7, %v158_v6  ;;  %v553_v6 = vld [vmem:[#allocation2] ss:$0 sm:$0xff] }
 0x1b5   :  { %570 = vtanh.f32 %v331_v9 }
 0x1ba   :  { %v322_v11 = vpop.f32.mrf.mxu3 }
 0x1bb   :  { %v571_v12 = vpop.eup %570  ;;  %v332_v14 = vadd.f32 %v322_v11, %v161_v10 }
 0x1bc   :  { %530 = vmatmul.msk.f32.vlgmr.msrb.gmra.mxu1 %vm196_vm3, %v571_v12 }
 0x1bd   :  { %572 = vtanh.f32 %v332_v14 }
 0x1c2   :  { %v325_v18 = vpop.f32.mrf.mxu3 }
 0x1c3   :  { %v573_v20 = vpop.eup %572  ;;  %v333_v21 = vadd.f32 %v325_v18, %v164_v17 }
 0x1c4   :  { %531 = vmatmul.msk.f32.gmra.mxu1 %vm196_vm3, %v573_v20 }
 0x1c5   :  { %574 = vtanh.f32 %v333_v21 }
 0x1ca   :  { %v328_v24 = vpop.f32.mrf.mxu3 }
 0x1cb   :  { %v575_v25 = vpop.eup %574  ;;  %v334_v26 = vadd.f32 %v328_v24, %v167_v23 }
 0x1cc   :  { %532 = vmatmul.msk.f32.gmra.mxu1 %vm196_vm3, %v575_v25 }
 0x1cd   :  { %576 = vtanh.f32 %v334_v26 }
 0x1d3   :  { %v577_v27 = vpop.eup %576 }
 0x1d4   :  { %533 = vmatmul.msk.f32.gmra.mxu1 %vm196_vm3, %v577_v27 }
 0x239   :  { %v368_v35 = vpop.f32.mrf.mxu1 }
 0x23a   :  { %v380_v36 = vadd.f32 %v368_v35, %v170_v34 }
 0x23c   :  { %578 = vtanh.f32 %v380_v36 }
 0x241   :  { %v371_v40 = vpop.f32.mrf.mxu1 }
 0x242   :  { %v579_v41 = vpop.eup %578  ;;  %v381_v42 = vadd.f32 %v371_v40, %v173_v39 }
 0x243   :  { %535 = vmatmul.msk.f32.vlgmr.msrb.gmra.mxu2 %vm196_vm3, %v579_v41 }
 0x244   :  { %580 = vtanh.f32 %v381_v42 }
 0x249   :  { %v374_v44 = vpop.f32.mrf.mxu1 }
 0x24a   :  { %v581_v45 = vpop.eup %580  ;;  %v382_v46 = vadd.f32 %v374_v44, %v176_v43 }
 0x24b   :  { %536 = vmatmul.msk.f32.gmra.mxu2 %vm196_vm3, %v581_v45 }
 0x24c   :  { %582 = vtanh.f32 %v382_v46 }
 0x251   :  { %v377_v48 = vpop.f32.mrf.mxu1 }
 0x252   :  { %v583_v49 = vpop.eup %582  ;;  %v383_v50 = vadd.f32 %v377_v48, %v179_v47 }
 0x253   :  { %537 = vmatmul.msk.f32.gmra.mxu2 %vm196_vm3, %v583_v49 }
 0x254   :  { %584 = vtanh.f32 %v383_v50 }
 0x25a   :  { %v585_v51 = vpop.eup %584 }
 0x25b   :  { %538 = vmatmul.msk.f32.gmra.mxu2 %vm196_vm3, %v585_v51 }
 0x2c6   :  { %v417_v54 = vpop.f32.mrf.mxu2 }
 0x2c7   :  { %v429_v55 = vadd.f32 %v417_v54, %v182_v53 }
 0x2c9   :  { %586 = vtanh.f32 %v429_v55 }
 0x2ce   :  { %v420_v58 = vpop.f32.mrf.mxu2 }
 0x2cf   :  { %v587_v59 = vpop.eup %586  ;;  %v430_v60 = vadd.f32 %v420_v58, %v185_v57 }
 0x2d0   :  { %540 = vmatmul.msk.f32.vlgmr.msra.gmra.mxu3 %vm196_vm3, %v587_v59 }
 0x2d1   :  { %588 = vtanh.f32 %v430_v60 }
 0x2d6   :  { %v423_v62 = vpop.f32.mrf.mxu2 }
 0x2d7   :  { %v589_v63 = vpop.eup %588  ;;  %v431_v0 = vadd.f32 %v423_v62, %v188_v61 }
 0x2d8   :  { %541 = vmatmul.msk.f32.gmra.mxu3 %vm196_vm3, %v589_v63 }
 0x2d9   :  { %590 = vtanh.f32 %v431_v0 }
 0x2de   :  { %v426_v2 = vpop.f32.mrf.mxu2 }
 0x2df   :  { %v591_v3 = vpop.eup %590  ;;  %v432_v4 = vadd.f32 %v426_v2, %v191_v1 }
 0x2e0   :  { %542 = vmatmul.msk.f32.gmra.mxu3 %vm196_vm3, %v591_v3 }
 0x2e1   :  { %592 = vtanh.f32 %v432_v4 }
 0x2e7   :  { %v593_v5 = vpop.eup %592 }
 0x2e8   :  { %543 = vmatmul.msk.f32.gmra.mxu3 %vm196_vm3, %v593_v5 }
 0x353   :  { %v476_v13 = vpop.f32.mrf.mxu3 }
 0x354   :  { %v477_v7 = vadd.f32 %v553_v6, %v476_v13 }
 0x356   :  { %489 = vst.msk [vmem:[%s813_s6] sm:$0xff] %vm488_vm4, %v477_v7 }
 0x35b   :  { %v479_v8 = vpop.f32.mrf.mxu3 }
 0x35c   :  { %v480_v9 = vadd.f32 %v553_v6, %v479_v8 }
 0x35e   :  { %490 = vst.msk [vmem:[%s813_s6 + $0x8] sm:$0xff] %vm488_vm4, %v480_v9 }
 0x363   :  { %v482_v16 = vpop.f32.mrf.mxu3 }
 0x364   :  { %v483_v19 = vadd.f32 %v553_v6, %v482_v16 }
 0x366   :  { %491 = vst.msk [vmem:[%s813_s6 + $0x10] sm:$0xff] %vm488_vm4, %v483_v19 }
 0x36b   :  { %v485_v10 = vpop.f32.mrf.mxu3 }
 0x36c   :  { %v486_v11 = vadd.f32 %v553_v6, %v485_v10 }
 0x36e   :  { %492 = vst.msk [vmem:[%s813_s6 + $0x18] sm:$0xff] %vm488_vm4, %v486_v11 }

</bundles_post_ra>
